<compile_context>
chip_gen: v7x
topology: tpu7x:2x2x1
jax: 0.10.0
libtpu: 0.0.40
codegen_flags: <defaults>
</compile_context>

<pallas_src>
import functools

import jax
import jax.numpy as jnp
from jax.experimental import pallas as pl
from jax.experimental.pallas import tpu as pltpu

ALPHA = 0.25
GAMMA = 2.0          # gamma == 2.0 -> exact square (no pow / exp-log)
WEIGHTS = (1.0, 1.0)


def _round_up(x, m):
    return (x + m - 1) // m * m


def _make_kernel(B, C, T, tT):
    """Build the kernel body with static shape info baked in."""
    inv_bc = 1.0 / float(B * C)
    neg_init = float(jnp.finfo(jnp.float32).min)
    need_t_mask = (T % tT) != 0          # last T tile is partial -> mask it

    def kernel(logit_ref, frame_ref, target_ref, out_ref, fmax_ref):
        k = pl.program_id(0)

        @pl.when(k == 0)
        def _init():
            fmax_ref[...] = jnp.full(fmax_ref.shape, neg_init, jnp.float32)

        # Fold this T-tile into the running frame-max accumulator.
        tile = frame_ref[...]                                  # (B, tT, C), input dtype
        if need_t_mask:
            row = jax.lax.broadcasted_iota(jnp.int32, (1, tT, 1), 1)
            valid = (k * tT + row) < T
            neg = jnp.asarray(jnp.finfo(tile.dtype).min, tile.dtype)
            tile = jnp.where(valid, tile, neg)
        tile_max = jnp.max(tile, axis=1).astype(jnp.float32)   # (B, C)
        fmax_ref[...] = jnp.maximum(fmax_ref[...], tile_max)

        @pl.when(k == pl.num_programs(0) - 1)
        def _finalize():
            t = target_ref[...].astype(jnp.float32)            # (B, C)

            def focal_sum(x):
                x = x.astype(jnp.float32)
                e = jnp.exp(-jnp.abs(x))                       # shared: bce + sigmoid
                # numerically-stable BCEWithLogitsLoss(reduction='none')
                bce = jnp.maximum(x, 0.0) - x * t + jnp.log1p(e)
                inv = pl.reciprocal(1.0 + e, approx=True)      # EUP, ~free slot
                p = jnp.where(x >= 0.0, inv, e * inv)          # sigmoid(x)
                omp = 1.0 - p
                loss = t * (ALPHA * (omp * omp)) * bce + (1.0 - t) * (p * p) * bce
                return jnp.sum(loss)

            s_clip = focal_sum(logit_ref[...])
            s_frame = focal_sum(fmax_ref[...])
            out_ref[0, 0] = (WEIGHTS[0] * s_clip + WEIGHTS[1] * s_frame) * inv_bc

    return kernel


@functools.partial(jax.jit, static_argnames=("t_tile_bytes",))
def bce_focal_2way_loss(logit, framewise_logit, target, *, t_tile_bytes=4 << 20):
    B, C = logit.shape
    Bf, T, Cf = framewise_logit.shape
    assert (Bf, Cf) == (B, C), "shape mismatch between logit and framewise_logit"

    f_itemsize = jnp.dtype(framewise_logit.dtype).itemsize
    l_itemsize = jnp.dtype(logit.dtype).itemsize
    t_itemsize = jnp.dtype(target.dtype).itemsize

    # T-tile sized so one framewise buffer is ~t_tile_bytes.  Multiple of 16 keeps
    # the sublane rule happy for both f32 and bf16; if the whole T axis fits in
    # one tile we use the full extent (always a legal block dim).
    tT = max(16, (t_tile_bytes // max(1, B * C * f_itemsize)) // 16 * 16)
    if T <= tT:
        tT = T                                   # single tile, full extent
    grid = (pl.cdiv(T, tT),)

    # VMEM budget: double-buffered framewise tile + resident logit/target blocks
    # + running-max scratch + slack.  Stays within v7x scoped limits.
    vmem_bytes = (
        2 * B * tT * C * f_itemsize
        + 2 * B * C * (l_itemsize + t_itemsize)
        + B * C * 4
        + (2 << 20)
    )
    vmem_bytes = int(min(max(vmem_bytes, 4 << 20), 56 << 20))

    cost = pl.CostEstimate(
        flops=2 * B * T * C + 40 * B * C,
        transcendentals=6 * B * C,
        bytes_accessed=(
            framewise_logit.size * f_itemsize
            + logit.size * l_itemsize
            + target.size * t_itemsize
            + 4
        ),
    )

    out = pl.pallas_call(
        _make_kernel(B, C, T, tT),
        out_shape=jax.ShapeDtypeStruct((1, 1), jnp.float32),
        grid_spec=pltpu.PrefetchScalarGridSpec(
            num_scalar_prefetch=0,
            grid=grid,
            in_specs=[
                pl.BlockSpec((B, C), lambda k: (0, 0)),        # clipwise logit (resident)
                pl.BlockSpec((B, tT, C), lambda k: (0, k, 0)),  # framewise tile (streamed)
                pl.BlockSpec((B, C), lambda k: (0, 0)),        # target (resident)
            ],
            out_specs=pl.BlockSpec(memory_space=pltpu.MemorySpace.SMEM),
            scratch_shapes=[pltpu.VMEM((B, C), jnp.float32)],   # running max
        ),
        compiler_params=pltpu.CompilerParams(
            dimension_semantics=("arbitrary",),   # T is a reduction axis
            vmem_limit_bytes=vmem_bytes,
        ),
        cost_estimate=cost,
    )(logit, framewise_logit, target)
    # TODO(synk): for v7x megacore, add a leading "parallel" T-split grid axis with
    # per-core partial maxes reduced in a tiny second pass.
    return out[0, 0]


def _reference(logit, framewise_logit, target):
    # pure-JAX reference for sanity checking
    t = target.astype(jnp.float32)

    def focal(x):
        x = x.astype(jnp.float32)
        bce = jnp.maximum(x, 0.0) - x * t + jnp.log1p(jnp.exp(-jnp.abs(x)))
        p = jax.nn.sigmoid(x)
        loss = t * ALPHA * (1.0 - p) ** 2 * bce + (1.0 - t) * p ** 2 * bce
        return jnp.mean(loss)

    fmax = jnp.max(framewise_logit.astype(jnp.float32), axis=1)
    return WEIGHTS[0] * focal(logit) + WEIGHTS[1] * focal(fmax)


if __name__ == "__main__":
    B, T, C = 2, 8, 32
    key = jax.random.PRNGKey(0)
    k1, k2, k3 = jax.random.split(key, 3)

    logit = jax.random.normal(k1, (B, C), dtype=jnp.float32)
    framewise_logit = jax.random.normal(k2, (B, T, C), dtype=jnp.float32)
    target = (jax.random.uniform(k3, (B, C)) < 0.5).astype(jnp.float32)

    # f32 path (single T tile)
    loss = bce_focal_2way_loss(logit, framewise_logit, target)
    jax.block_until_ready(loss)
    ref = _reference(logit, framewise_logit, target)
    assert jnp.allclose(loss, ref, atol=5e-3, rtol=5e-3), (loss, ref)

    # bf16 streaming path (halves HBM bytes on the framewise read)
    loss_bf16 = bce_focal_2way_loss(
        logit.astype(jnp.bfloat16), framewise_logit.astype(jnp.bfloat16), target
    )
    jax.block_until_ready(loss_bf16)
    ref_bf16 = _reference(
        logit.astype(jnp.bfloat16), framewise_logit.astype(jnp.bfloat16), target
    )
    assert jnp.allclose(loss_bf16, ref_bf16, atol=1e-2, rtol=1e-2), (loss_bf16, ref_bf16)

    # multi-tile / partial-last-tile path: force tiny tiles so grid > 1 and the
    # last T tile is masked in-kernel (exercises the streaming reduction).
    B2, T2, C2 = 2, 200, 96
    k4, k5, k6 = jax.random.split(jax.random.PRNGKey(0), 3)
    logit2 = jax.random.normal(k4, (B2, C2), dtype=jnp.float32)
    frame2 = jax.random.normal(k5, (B2, T2, C2), dtype=jnp.float32)
    target2 = (jax.random.uniform(k6, (B2, C2)) < 0.5).astype(jnp.float32)
    loss2 = bce_focal_2way_loss(logit2, frame2, target2, t_tile_bytes=B2 * 48 * C2 * 4)
    jax.block_until_ready(loss2)
    ref2 = _reference(logit2, frame2, target2)
    assert jnp.allclose(loss2, ref2, atol=5e-3, rtol=5e-3), (loss2, ref2)

    print("KERNEL_OK")
</pallas_src>

<mosaic_0001>
module attributes {stable_mosaic.version = 11 : i64} {
  func.func @kernel(%arg0: i32, %arg1: memref<2x32xf32, #tpu.memory_space<vmem>>, %arg2: memref<2x8x32xf32, #tpu.memory_space<vmem>>, %arg3: memref<2x32xf32, #tpu.memory_space<vmem>>, %arg4: memref<1x1xf32, #tpu.memory_space<smem>>, %arg5: memref<2x32xf32, #tpu.memory_space<vmem>>) attributes {dimension_semantics = [#tpu.dimension_semantics<arbitrary>], iteration_bounds = array<i64: 1>, scalar_prefetch = 0 : i64, scratch_operands = 1 : i64, tpu.core_type = #tpu.core_type<tc>, window_params = [{pipeline_mode = #tpu.pipeline_mode<synchronous>, transform_indices = @transform_0, window_bounds = array<i64: 2, 32>}, {transform_indices = @transform_1, window_bounds = array<i64: 2, 8, 32>}, {pipeline_mode = #tpu.pipeline_mode<synchronous>, transform_indices = @transform_2, window_bounds = array<i64: 2, 32>}, {transform_indices = @transform_3, window_bounds = array<i64: 1, 1>}]} {
    %c0_i32 = arith.constant 0 : i32
    %0 = arith.cmpi eq, %arg0, %c0_i32 : i32
    %1 = arith.extui %0 : i1 to i32
    %c0_i32_0 = arith.constant 0 : i32
    %2 = arith.cmpi ne, %1, %c0_i32_0 : i32
    scf.if %2 {
      %cst_9 = arith.constant -3.40282347E+38 : f32
      %11 = vector.broadcast %cst_9 : f32 to vector<2x32xf32>
      %c0_10 = arith.constant 0 : index
      %c0_11 = arith.constant 0 : index
      %12 = vector.load %arg5[%c0_10, %c0_11] : memref<2x32xf32, #tpu.memory_space<vmem>>, vector<2x32xf32>
      tpu.vector_store %arg5[%c0_10, %c0_11], %11 {strides = array<i32>} : memref<2x32xf32, #tpu.memory_space<vmem>>, vector<2x32xf32>,
    } else {
    }
    %c0 = arith.constant 0 : index
    %c0_1 = arith.constant 0 : index
    %c0_2 = arith.constant 0 : index
    %3 = vector.load %arg2[%c0, %c0_1, %c0_2] : memref<2x8x32xf32, #tpu.memory_space<vmem>>, vector<2x8x32xf32>
    %cst = arith.constant dense<0xFF800000> : vector<2x32xf32>
    %4 = vector.multi_reduction <maximumf>, %3, %cst [1] : vector<2x8x32xf32> to vector<2x32xf32>
    %c0_3 = arith.constant 0 : index
    %c0_4 = arith.constant 0 : index
    %5 = vector.load %arg5[%c0_3, %c0_4] : memref<2x32xf32, #tpu.memory_space<vmem>>, vector<2x32xf32>
    %6 = arith.maximumf %5, %4 : vector<2x32xf32>
    %c0_5 = arith.constant 0 : index
    %c0_6 = arith.constant 0 : index
    %7 = vector.load %arg5[%c0_5, %c0_6] : memref<2x32xf32, #tpu.memory_space<vmem>>, vector<2x32xf32>
    tpu.vector_store %arg5[%c0_5, %c0_6], %6 {strides = array<i32>} : memref<2x32xf32, #tpu.memory_space<vmem>>, vector<2x32xf32>,
    %c0_i32_7 = arith.constant 0 : i32
    %8 = arith.cmpi eq, %arg0, %c0_i32_7 : i32
    %9 = arith.extui %8 : i1 to i32
    %c0_i32_8 = arith.constant 0 : i32
    %10 = arith.cmpi ne, %9, %c0_i32_8 : i32
    scf.if %10 {
      %c0_9 = arith.constant 0 : index
      %c0_10 = arith.constant 0 : index
      %11 = vector.load %arg3[%c0_9, %c0_10] : memref<2x32xf32, #tpu.memory_space<vmem>>, vector<2x32xf32>
      %c0_11 = arith.constant 0 : index
      %c0_12 = arith.constant 0 : index
      %12 = vector.load %arg1[%c0_11, %c0_12] : memref<2x32xf32, #tpu.memory_space<vmem>>, vector<2x32xf32>
      %13 = math.absf %12 : vector<2x32xf32>
      %cst_13 = arith.constant 0.000000e+00 : f32
      %14 = vector.broadcast %cst_13 : f32 to vector<2x32xf32>
      %15 = arith.subf %14, %13 : vector<2x32xf32>
      %16 = math.exp %15 : vector<2x32xf32>
      %cst_14 = arith.constant 0.000000e+00 : f32
      %17 = vector.broadcast %cst_14 : f32 to vector<2x32xf32>
      %18 = arith.maximumf %12, %17 : vector<2x32xf32>
      %19 = arith.mulf %12, %11 : vector<2x32xf32>
      %20 = arith.subf %18, %19 : vector<2x32xf32>
      %21 = math.log1p %16 : vector<2x32xf32>
      %22 = arith.addf %20, %21 : vector<2x32xf32>
      %cst_15 = arith.constant 1.000000e+00 : f32
      %23 = vector.broadcast %cst_15 : f32 to vector<2x32xf32>
      %24 = arith.addf %23, %16 : vector<2x32xf32>
      %25 = tpu.reciprocal %24 {approx = true} : vector<2x32xf32> -> vector<2x32xf32>
      %cst_16 = arith.constant 0.000000e+00 : f32
      %26 = vector.broadcast %cst_16 : f32 to vector<2x32xf32>
      %27 = arith.cmpf oge, %12, %26 : vector<2x32xf32>
      %28 = arith.mulf %16, %25 : vector<2x32xf32>
      %29 = arith.select %27, %25, %28 : vector<2x32xi1>, vector<2x32xf32>
      %cst_17 = arith.constant 1.000000e+00 : f32
      %30 = vector.broadcast %cst_17 : f32 to vector<2x32xf32>
      %31 = arith.subf %30, %29 : vector<2x32xf32>
      %32 = arith.mulf %31, %31 : vector<2x32xf32>
      %cst_18 = arith.constant 2.500000e-01 : f32
      %33 = vector.broadcast %cst_18 : f32 to vector<2x32xf32>
      %34 = arith.mulf %33, %32 : vector<2x32xf32>
      %35 = arith.mulf %11, %34 : vector<2x32xf32>
      %36 = arith.mulf %35, %22 : vector<2x32xf32>
      %cst_19 = arith.constant 1.000000e+00 : f32
      %37 = vector.broadcast %cst_19 : f32 to vector<2x32xf32>
      %38 = arith.subf %37, %11 : vector<2x32xf32>
      %39 = arith.mulf %29, %29 : vector<2x32xf32>
      %40 = arith.mulf %38, %39 : vector<2x32xf32>
      %41 = arith.mulf %40, %22 : vector<2x32xf32>
      %42 = arith.addf %36, %41 : vector<2x32xf32>
      %43 = vector.shape_cast %42 : vector<2x32xf32> to vector<1x2x32xf32>
      %cst_20 = arith.constant dense<0.000000e+00> : vector<1xf32>
      %44 = vector.multi_reduction <add>, %43, %cst_20 [1, 2] : vector<1x2x32xf32> to vector<1xf32>
      %45 = vector.shape_cast %44 : vector<1xf32> to vector<1x1x1xf32>
      %46 = vector.extract %45[0, 0, 0] : f32 from vector<1x1x1xf32>
      %c0_21 = arith.constant 0 : index
      %c0_22 = arith.constant 0 : index
      %47 = vector.load %arg5[%c0_21, %c0_22] : memref<2x32xf32, #tpu.memory_space<vmem>>, vector<2x32xf32>
      %48 = math.absf %47 : vector<2x32xf32>
      %cst_23 = arith.constant 0.000000e+00 : f32
      %49 = vector.broadcast %cst_23 : f32 to vector<2x32xf32>
      %50 = arith.subf %49, %48 : vector<2x32xf32>
      %51 = math.exp %50 : vector<2x32xf32>
      %cst_24 = arith.constant 0.000000e+00 : f32
      %52 = vector.broadcast %cst_24 : f32 to vector<2x32xf32>
      %53 = arith.maximumf %47, %52 : vector<2x32xf32>
      %54 = arith.mulf %47, %11 : vector<2x32xf32>
      %55 = arith.subf %53, %54 : vector<2x32xf32>
      %56 = math.log1p %51 : vector<2x32xf32>
      %57 = arith.addf %55, %56 : vector<2x32xf32>
      %cst_25 = arith.constant 1.000000e+00 : f32
      %58 = vector.broadcast %cst_25 : f32 to vector<2x32xf32>
      %59 = arith.addf %58, %51 : vector<2x32xf32>
      %60 = tpu.reciprocal %59 {approx = true} : vector<2x32xf32> -> vector<2x32xf32>
      %cst_26 = arith.constant 0.000000e+00 : f32
      %61 = vector.broadcast %cst_26 : f32 to vector<2x32xf32>
      %62 = arith.cmpf oge, %47, %61 : vector<2x32xf32>
      %63 = arith.mulf %51, %60 : vector<2x32xf32>
      %64 = arith.select %62, %60, %63 : vector<2x32xi1>, vector<2x32xf32>
      %cst_27 = arith.constant 1.000000e+00 : f32
      %65 = vector.broadcast %cst_27 : f32 to vector<2x32xf32>
      %66 = arith.subf %65, %64 : vector<2x32xf32>
      %67 = arith.mulf %66, %66 : vector<2x32xf32>
      %cst_28 = arith.constant 2.500000e-01 : f32
      %68 = vector.broadcast %cst_28 : f32 to vector<2x32xf32>
      %69 = arith.mulf %68, %67 : vector<2x32xf32>
      %70 = arith.mulf %11, %69 : vector<2x32xf32>
      %71 = arith.mulf %70, %57 : vector<2x32xf32>
      %cst_29 = arith.constant 1.000000e+00 : f32
      %72 = vector.broadcast %cst_29 : f32 to vector<2x32xf32>
      %73 = arith.subf %72, %11 : vector<2x32xf32>
      %74 = arith.mulf %64, %64 : vector<2x32xf32>
      %75 = arith.mulf %73, %74 : vector<2x32xf32>
      %76 = arith.mulf %75, %57 : vector<2x32xf32>
      %77 = arith.addf %71, %76 : vector<2x32xf32>
      %78 = vector.shape_cast %77 : vector<2x32xf32> to vector<1x2x32xf32>
      %cst_30 = arith.constant dense<0.000000e+00> : vector<1xf32>
      %79 = vector.multi_reduction <add>, %78, %cst_30 [1, 2] : vector<1x2x32xf32> to vector<1xf32>
      %80 = vector.shape_cast %79 : vector<1xf32> to vector<1x1x1xf32>
      %81 = vector.extract %80[0, 0, 0] : f32 from vector<1x1x1xf32>
      %cst_31 = arith.constant 1.000000e+00 : f32
      %82 = arith.mulf %cst_31, %46 : f32
      %cst_32 = arith.constant 1.000000e+00 : f32
      %83 = arith.mulf %cst_32, %81 : f32
      %84 = arith.addf %82, %83 : f32
      %cst_33 = arith.constant 1.562500e-02 : f32
      %85 = arith.mulf %84, %cst_33 : f32
      %c0_34 = arith.constant 0 : index
      %c0_35 = arith.constant 0 : index
      %86 = memref.load %arg4[%c0_34, %c0_35] : memref<1x1xf32, #tpu.memory_space<smem>>
      memref.store %85, %arg4[%c0_34, %c0_35] : memref<1x1xf32, #tpu.memory_space<smem>>
    } else {
    }
    return
  }
  func.func @transform_0(%arg0: i32) -> (i32, i32) {
    %c0_i32 = arith.constant 0 : i32
    %c0_i32_0 = arith.constant 0 : i32
    %c0_i32_1 = arith.constant 0 : i32
    return %c0_i32, %c0_i32_0 : i32, i32
  }
  func.func @transform_1(%arg0: i32) -> (i32, i32, i32) {
    %c0_i32 = arith.constant 0 : i32
    %c0_i32_0 = arith.constant 0 : i32
    %c0_i32_1 = arith.constant 0 : i32
    return %c0_i32, %arg0, %c0_i32_0 : i32, i32, i32
  }
  func.func @transform_2(%arg0: i32) -> (i32, i32) {
    %c0_i32 = arith.constant 0 : i32
    %c0_i32_0 = arith.constant 0 : i32
    %c0_i32_1 = arith.constant 0 : i32
    return %c0_i32, %c0_i32_0 : i32, i32
  }
  func.func @transform_3(%arg0: i32) -> (i32, i32) {
    %c0_i32 = arith.constant 0 : i32
    %c0_i32_0 = arith.constant 0 : i32
    %c0_i32_1 = arith.constant 0 : i32
    return %c0_i32, %c0_i32_0 : i32, i32
  }
}

</mosaic_0001>

<bundles_post_ra>
// kernel: bce_focal_2way_loss.1
= control target key start
LH: loop header
LB: loop body
LE: loop exit
PB: predicated region body
PF: predicated region fallthrough
CT: control target
= control target key end

     0   :  { %8 = vsyncpa [#allocation4], 0  ;;  %s339_s0 = inlined_call_operand.hbm [shape: f32[2,32], index: 0, kind: input, shape index: {}]   ;;  %s340_s1 = inlined_call_operand.hbm [shape: f32[2,8,32], index: 1, kind: input, shape index: {}]   ;;  %s341_s2 = inlined_call_operand.vmem [shape: f32[2,32], index: 2, kind: input, shape index: {}]   ;;  %s342_s3 = inlined_call_operand.hbm [shape: f32[1,1], index: 3, kind: output, shape index: {}]  }
   0x1   :  { %9 = vsyncpa [#allocation7], 0 }
   0x2   :  { %10 = vsyncpa [#allocation5], 0  ;;  %s263_s12 = smov [#allocation3]   ;;  %s264_s14 = smov [#allocation6]  }
   0x3   :  { %s17_s13 = sshll.u32 %s263_s12, 4  ;;  %s26_s15 = sshll.u32 %s264_s14, 4  ;;  %s18_s13 = int_to_ptr.vmem [resolvable:$true] %s17_s13  ;;  %s289_s15 = int_to_ptr.vmem [resolvable:$true] %s26_s15 }
   0x4   :  { %s203_s18 = scalar_lea.hbm %s339_s0, 32 }
   0x5   :  { %p204_p0 = scmp.ne.s32.totalorder %s339_s0, %s203_s18  ;;  %p207_p1 = scmp.lt.u32.totalorder %s203_s18, %s339_s0 }
   0x7   :  { %p209_p2 = pnand %p207_p1, %p204_p0 }
   0x9   :  { %212 = shalt.err (!%p209_p2)
}
   0xa   :  { %s213_s23 = scalar_lea.vmem %s18_s13, 32  ;;  %p218_p4 = scmp.lt.s32.totalorder %s18_s13, %s18_s13 }
   0xb   :  { %p214_p3 = scmp.ne.s32.totalorder %s18_s13, %s213_s23  ;;  %p219_p5 = scmp.lt.s32.totalorder %s213_s23, %s213_s23 }
   0xd   :  { %p220_p6 = por %p219_p5, %p218_p4 }
   0xf   :  { %p221_p7 = pnand %p220_p6, %p214_p3 }
  0x11   :  { %224 = shalt.err (!%p221_p7)
}
  0x12   :  { %20 = dma.hbm_to_vmem [thread:$0]  %s339_s0, 32, %s18_s13, [#allocation4]  }
  0x13   :  { %s225_s28 = scalar_lea.hbm %s340_s1, 256 }
  0x14   :  { %p226_p8 = scmp.ne.s32.totalorder %s340_s1, %s225_s28  ;;  %p229_p9 = scmp.lt.u32.totalorder %s225_s28, %s340_s1 }
  0x16   :  { %p231_p10 = pnand %p229_p9, %p226_p8 }
  0x18   :  { %234 = shalt.err (!%p231_p10)
}
  0x19   :  { %s235_s6 = scalar_lea.vmem %s289_s15, 256  ;;  %p240_p12 = scmp.lt.s32.totalorder %s289_s15, %s289_s15 }
  0x1a   :  { %p236_p11 = scmp.ne.s32.totalorder %s289_s15, %s235_s6  ;;  %p241_p13 = scmp.lt.s32.totalorder %s235_s6, %s235_s6 }
  0x1c   :  { %p242_p0 = por %p241_p13, %p240_p12 }
  0x1e   :  { %p243_p1 = pnand %p242_p0, %p236_p11 }
  0x20   :  { %246 = shalt.err (!%p243_p1)
}
  0x21   :  { %s265_s0 = smov 128   ;;  %s266_s7 = smov 8  }
  0x22   :  { %32 = dma.hbm_to_vmem [thread:$0]  %s340_s1, 256, %s289_s15, [#allocation7], %s265_s0, %s265_s0, %s266_s7  }
  0x23   :  { %257 = dma.done.wait [#allocation4], 32  }
  0x24   :  { %258 = vsyncadd [#allocation4], 4294967264 }
  0x25   :  { %259 = dma.done.wait [#allocation7], 256  }
  0x26   :  { %260 = vsyncadd [#allocation7], 4294967040  ;;  %vm45_vm0 = vcmask 254976   ;;  %v267_v0 = vmov -3.4028235e+38   ;;  %vm49_vm1 = vcmask 261120  }
  0x27   :  { %46 = vst.msk [vmem:[#allocation2] sm:$0x3] %vm45_vm0, %v267_v0  ;;  %v77_v1 = vld [vmem:[#allocation3] sm:$0x3]  ;;  %v47_v2 = vld [vmem:[#allocation6] sm:$0xff]  ;;  %v48_v4 = vld [vmem:[#allocation6 + $0x8] sm:$0xff] }
  0x28   :  { %v78_v3 = vand.u32 2147483647, %v77_v1  ;;  %v50_v5 = vsel %vm49_vm1, %v47_v2, -inf  ;;  %v57_v6 = vsel %vm49_vm1, %v48_v4, -inf  ;;  %vm67_vm2 = vcmask 1041409   ;;  %s247_s16 = scalar_lea.hbm %s342_s3, 16 }
  0x29   :  { %v51_v8 = vrot.slane %v50_v5, 4  ;;  %v58_v9 = vrot.slane %v57_v6, 4  ;;  %v76_v28 = vld [vmem:[%s341_s2] sm:$0x3]  ;;  %v82_v33 = vmax.f32 %v77_v1, 0.0  ;;  %vm97_vm4 = vcmp.ge.f32.partialorder %v77_v1, 0.0  ;;  %p248_p2 = scmp.ne.s32.totalorder %s342_s3, %s247_s16  ;;  %p251_p3 = scmp.lt.u32.totalorder %s247_s16, %s342_s3 }
  0x2a   :  { %v79_v7 = vsub.f32 0.0, %v78_v3  ;;  %v83_v34 = vmul.f32 %v77_v1, %v76_v28  ;;  %v105_v42 = vsub.f32 1.0, %v76_v28 }
  0x2b   :  { %v52_v11 = vmax.f32 %v50_v5, %v51_v8  ;;  %v59_v12 = vmax.f32 %v57_v6, %v58_v9  ;;  %p253_p4 = pnand %p251_p3, %p248_p2 }
  0x2c   :  { %v80_v10 = vmul.f32 1.442695, %v79_v7  ;;  %v84_v41 = vsub.f32 %v82_v33, %v83_v34 }
  0x2d   :  { %v53_v13 = vrot.slane %v52_v11, 2  ;;  %v60_v14 = vrot.slane %v59_v12, 2 }
  0x2e   :  { %191 = vpow2.f32 %v80_v10  ;;  %v64_v21 = vld [vmem:[#allocation2] sm:$0x3] }
  0x2f   :  { %v54_v15 = vmax.f32 %v52_v11, %v53_v13  ;;  %v61_v16 = vmax.f32 %v59_v12, %v60_v14 }
  0x31   :  { %v55_v17 = vrot.slane %v54_v15, 1  ;;  %v62_v18 = vrot.slane %v61_v16, 1 }
  0x33   :  { %v56_v19 = vmax.f32 %v54_v15, %v55_v17  ;;  %v63_v20 = vmax.f32 %v61_v16, %v62_v18 }
  0x35   :  { %v68_v22 = vsel %vm67_vm2, %v63_v20, %v56_v19 }
  0x36   :  { %v70_v23 = vmax.f32 %v64_v21, %v68_v22 }
  0x38   :  { %v192_v24 = vpop.eup %191  ;;  %72 = vst.msk [vmem:[#allocation2] sm:$0x3] %vm45_vm0, %v70_v23 }
  0x39   :  { %v85_v25 = vadd.f32 1.0, %v192_v24  ;;  %v88_v26 = vmul.f32 -0.5, %v192_v24  ;;  %v91_v31 = vand.u32 2147483647, %v192_v24 }
  0x3b   :  { %193 = vlog2.f32 %v85_v25  ;;  %v89_v29 = vadd.f32 1.0, %v88_v26  ;;  %vm92_vm3 = vcmp.lt.f32.partialorder %v91_v31, 0.0004427343 }
  0x3c   :  { %195 = vrcp.f32 %v85_v25 }
  0x3d   :  { %v90_v36 = vmul.f32 %v192_v24, %v89_v29 }
  0x3f   :  { %v120_v27 = vld [vmem:[#allocation2] sm:$0x3] }
  0x40   :  { %v121_v30 = vand.u32 2147483647, %v120_v27  ;;  %v125_v61 = vmax.f32 %v120_v27, 0.0  ;;  %v126_v62 = vmul.f32 %v120_v27, %v76_v28  ;;  %vm140_vm6 = vcmp.ge.f32.partialorder %v120_v27, 0.0 }
  0x42   :  { %v122_v32 = vsub.f32 0.0, %v121_v30  ;;  %v127_v4 = vsub.f32 %v125_v61, %v126_v62 }
  0x44   :  { %v123_v37 = vmul.f32 1.442695, %v122_v32 }
  0x45   :  { %v194_v35 = vpop.eup %193 }
  0x46   :  { %v196_v38 = vpop.eup %195  ;;  %v87_v39 = vmul.f32 0.6931472, %v194_v35  ;;  %197 = vpow2.f32 %v123_v37 }
  0x47   :  { %v98_v40 = vmul.f32 %v196_v38, %v192_v24 }
  0x48   :  { %v93_v43 = vsel %vm92_vm3, %v90_v36, %v87_v39 }
  0x49   :  { %v99_v44 = vsel %vm97_vm4, %v196_v38, %v98_v40  ;;  %v94_v47 = vadd.f32 %v93_v43, %v84_v41 }
  0x4a   :  { %v100_v45 = vsub.f32 1.0, %v99_v44  ;;  %v106_v46 = vmul.f32 %v99_v44, %v99_v44 }
  0x4c   :  { %v101_v48 = vmul.f32 %v100_v45, %v100_v45  ;;  %v107_v49 = vmul.f32 %v106_v46, %v105_v42 }
  0x4e   :  { %v102_v50 = vmul.f32 0.25, %v101_v48  ;;  %v108_v52 = vmul.f32 %v107_v49, %v94_v47 }
  0x50   :  { %v103_v51 = vmul.f32 %v102_v50, %v76_v28  ;;  %v198_v53 = vpop.eup %197 }
  0x51   :  { %v128_v55 = vadd.f32 1.0, %v198_v53  ;;  %v131_v58 = vmul.f32 -0.5, %v198_v53  ;;  %v134_v60 = vand.u32 2147483647, %v198_v53 }
  0x52   :  { %v104_v54 = vmul.f32 %v103_v51, %v94_v47 }
  0x53   :  { %199 = vlog2.f32 %v128_v55  ;;  %v132_v59 = vadd.f32 1.0, %v131_v58  ;;  %vm135_vm5 = vcmp.lt.f32.partialorder %v134_v60, 0.0004427343 }
  0x54   :  { %v109_v56 = vadd.f32 %v108_v52, %v104_v54  ;;  %201 = vrcp.f32 %v128_v55 }
  0x55   :  { %v133_v0 = vmul.f32 %v198_v53, %v132_v59 }
  0x56   :  { %v110_v57 = vsel %vm45_vm0, %v109_v56, 0.0 }
  0x57   :  { %111 = vadd.xlane.f32.xlu0 %v110_v57 }
  0x5d   :  { %v200_v63 = vpop.eup %199 }
  0x5e   :  { %v202_v1 = vpop.eup %201  ;;  %v130_v2 = vmul.f32 0.6931472, %v200_v63 }
  0x5f   :  { %v141_v3 = vmul.f32 %v202_v1, %v198_v53 }
  0x60   :  { %v136_v5 = vsel %vm135_vm5, %v133_v0, %v130_v2 }
  0x61   :  { %v142_v6 = vsel %vm140_vm6, %v202_v1, %v141_v3  ;;  %v137_v9 = vadd.f32 %v136_v5, %v127_v4 }
  0x62   :  { %v143_v7 = vsub.f32 1.0, %v142_v6  ;;  %v148_v8 = vmul.f32 %v142_v6, %v142_v6 }
  0x64   :  { %v144_v10 = vmul.f32 %v143_v7, %v143_v7  ;;  %v149_v11 = vmul.f32 %v148_v8, %v105_v42 }
  0x66   :  { %v145_v12 = vmul.f32 0.25, %v144_v10  ;;  %v150_v14 = vmul.f32 %v149_v11, %v137_v9 }
  0x68   :  { %v146_v13 = vmul.f32 %v145_v12, %v76_v28 }
  0x6a   :  { %v147_v15 = vmul.f32 %v146_v13, %v137_v9 }
  0x6c   :  { %v151_v16 = vadd.f32 %v150_v14, %v147_v15 }
  0x6e   :  { %v152_v17 = vsel %vm45_vm0, %v151_v16, 0.0 }
  0x6f   :  { %153 = vadd.xlane.f32.xlu0 %v152_v17 }
  0xe4   :  { %v112_v18 = vpop.xlane.xlu0 %111 }
  0xe5   :  { %v113_v19 = vrot.slane %v112_v18, 4 }
  0xe7   :  { %v114_v20 = vadd.f32 %v113_v19, %v112_v18 }
  0xe9   :  { %v115_v21 = vrot.slane %v114_v20, 2 }
  0xeb   :  { %v116_v22 = vadd.f32 %v115_v21, %v114_v20 }
  0xed   :  { %v117_v23 = vrot.slane %v116_v22, 1 }
  0xef   :  { %v118_v24 = vadd.f32 %v117_v23, %v116_v22 }
  0xf1   :  { %181 = vpush %v118_v24 }
  0xfc   :  { %v154_v25 = vpop.xlane.xlu0 %153 }
  0xfd   :  { %v155_v26 = vrot.slane %v154_v25, 4 }
  0xff   :  { %v156_v27 = vadd.f32 %v155_v26, %v154_v25 }
 0x101   :  { %v157_v29 = vrot.slane %v156_v27, 2 }
 0x103   :  { %v158_v30 = vadd.f32 %v157_v29, %v156_v27 }
 0x105   :  { %v159_v28 = vrot.slane %v158_v30, 1 }
 0x107   :  { %v160_v31 = vadd.f32 %v159_v28, %v158_v30 }
 0x109   :  { %183 = vpush %v160_v31 }
 0x122   :  { %s182_s2 = spop %181 }
 0x13a   :  { %s184_s11 = spop %183 }
 0x13b   :  { %s162_s12 = sadd.f32 %s184_s11, %s182_s2 }
 0x13d   :  { %s163_s13 = smul.f32 0.015625, %s162_s12 }
 0x13f   :  { %165 = sst [smem:[#allocation8]] %s163_s13 }
 0x140   :  { %256 = shalt.err (!%p253_p4)
}
 0x141   :  { %s268_s21 = smov [#allocation8]  }
 0x142   :  { %173 = dma.smem_to_hbm %s268_s21, 16, %s342_s3, [#allocation5]  }
 0x143   :  { %261 = dma.done.wait [#allocation5], 16  }
 0x144   :  { %262 = vsyncadd [#allocation5], 4294967280 }
 0x145   :  { %177 = sfence }
 0x146   :  { %178 = vsyncpa [#allocation4], 1 }
 0x147   :  { %179 = vsyncpa [#allocation7], 1 }
 0x148   :  { %180 = vsyncpa [#allocation5], 1 }

</bundles_post_ra>
